<compile_context>
chip_gen: v5e
topology: v5e:2x2
jax: 0.10.0
libtpu: 0.0.40
codegen_flags: <defaults>
</compile_context>

<pallas_src>
import jax
import jax.numpy as jnp
from jax.experimental import pallas as pl
from jax.experimental.pallas import tpu as pltpu


def _hard_sigmoid_kernel(x_ref, o_ref):
    x = x_ref[...]
    # clamp(x + 3, 0, 6) * (1/6)  (multiply by 1/6; <=1 ULP vs torch's divide — fine for an activation)
    y = jnp.clip(x + jnp.asarray(3, x.dtype),
                 jnp.asarray(0, x.dtype),
                 jnp.asarray(6, x.dtype)) * jnp.asarray(1.0 / 6.0, x.dtype)
    o_ref[...] = y.astype(o_ref.dtype)


def hard_sigmoid(x, *, block_rows=8192, donate_input=False):
    """Applies HardSigmoid elementwise. Accepts any shape; preserves shape/dtype."""
    orig_shape = x.shape
    orig_dtype = x.dtype
    n = x.size
    lane = 128

    rem = n % lane
    rows = pl.cdiv(n, lane)

    x_flat = x.reshape(-1)
    if rem != 0:
        # Rare fallback (conv activations are almost always a multiple of 128):
        # pad only up to the next lane boundary.
        x_flat = jnp.pad(x_flat, (0, lane - rem))
    x2d = x_flat.reshape(rows, lane)

    # Clamp the block to the (sublane-aligned) problem size so tiny inputs
    # don't compile a huge, mostly-padded tile. Block rows stay a multiple of 8.
    eff_block_rows = max(8, min(block_rows, pl.cdiv(rows, 8) * 8))

    # Ragged last block is handled by Pallas: partial reads are padded,
    # out-of-bounds writes are dropped — no host-side pad to a block multiple.
    grid = (pl.cdiv(rows, eff_block_rows),)

    out = pl.pallas_call(
        _hard_sigmoid_kernel,
        out_shape=jax.ShapeDtypeStruct((rows, lane), orig_dtype),
        grid_spec=pltpu.PrefetchScalarGridSpec(
            num_scalar_prefetch=0,
            grid=grid,
            in_specs=[pl.BlockSpec((eff_block_rows, lane), lambda i: (i, 0))],
            out_specs=pl.BlockSpec((eff_block_rows, lane), lambda i: (i, 0)),
        ),
        compiler_params=pltpu.CompilerParams(
            dimension_semantics=("parallel",),
            vmem_limit_bytes=32 * 1024 * 1024,
        ),
        input_output_aliases=({0: 0} if donate_input else {}),
    )(x2d)

    if rem != 0:
        return out.reshape(-1)[:n].reshape(orig_shape)
    return out.reshape(orig_shape)


if __name__ == "__main__":
    key = jax.random.PRNGKey(0)
    # NCHW input consistent with a conv-activation usage: batch=2, channels=4, spatial=16
    x = jax.random.normal(key, (2, 4, 16, 16), dtype=jnp.float32) * 4.0

    y = hard_sigmoid(x)
    jax.block_until_ready(y)

    # Reference check in plain JAX
    y_ref = jnp.clip(x + 3.0, 0.0, 6.0) / 6.0
    assert y.shape == x.shape and y.dtype == x.dtype
    assert jnp.allclose(y, y_ref, atol=1e-6), "mismatch vs reference"

    # Also exercise a non-multiple-of-128 shape through the fallback path.
    x2 = jax.random.normal(jax.random.PRNGKey(1), (3, 5, 7), dtype=jnp.float32) * 4.0
    y2 = hard_sigmoid(x2)
    jax.block_until_ready(y2)
    assert y2.shape == x2.shape and y2.dtype == x2.dtype
    assert jnp.allclose(y2, jnp.clip(x2 + 3.0, 0.0, 6.0) / 6.0, atol=1e-6)

    # And a bf16 path (same kernel, half the bytes).
    x3 = jax.random.normal(jax.random.PRNGKey(2), (2, 8, 32), dtype=jnp.bfloat16) * 4.0
    y3 = hard_sigmoid(x3)
    jax.block_until_ready(y3)
    y3_ref = (jnp.clip(x3.astype(jnp.float32) + 3.0, 0.0, 6.0) / 6.0).astype(jnp.bfloat16)
    assert y3.dtype == jnp.bfloat16
    assert jnp.allclose(y3.astype(jnp.float32), y3_ref.astype(jnp.float32), atol=2e-2)

    print("KERNEL_OK")
</pallas_src>

<mosaic_0001>
module attributes {stable_mosaic.version = 11 : i64} {
  func.func @_hard_sigmoid_kernel(%arg0: i32, %arg1: memref<16x128xf32, #tpu.memory_space<vmem>>, %arg2: memref<16x128xf32, #tpu.memory_space<vmem>>) attributes {dimension_semantics = [#tpu.dimension_semantics<parallel>], iteration_bounds = array<i64: 1>, scalar_prefetch = 0 : i64, scratch_operands = 0 : i64, tpu.core_type = #tpu.core_type<tc>, window_params = [{transform_indices = @transform_0, window_bounds = array<i64: 16, 128>}, {transform_indices = @transform_1, window_bounds = array<i64: 16, 128>}]} {
    %c0 = arith.constant 0 : index
    %c0_0 = arith.constant 0 : index
    %0 = vector.load %arg1[%c0, %c0_0] : memref<16x128xf32, #tpu.memory_space<vmem>>, vector<16x128xf32>
    %cst = arith.constant 3.000000e+00 : f32
    %1 = vector.broadcast %cst : f32 to vector<16x128xf32>
    %2 = arith.addf %0, %1 : vector<16x128xf32>
    %cst_1 = arith.constant 0.000000e+00 : f32
    %cst_2 = arith.constant 6.000000e+00 : f32
    %3 = vector.broadcast %cst_1 : f32 to vector<16x128xf32>
    %4 = arith.maximumf %3, %2 : vector<16x128xf32>
    %5 = vector.broadcast %cst_2 : f32 to vector<16x128xf32>
    %6 = arith.minimumf %5, %4 : vector<16x128xf32>
    %cst_3 = arith.constant 0.166666672 : f32
    %7 = vector.broadcast %cst_3 : f32 to vector<16x128xf32>
    %8 = arith.mulf %6, %7 : vector<16x128xf32>
    %c0_4 = arith.constant 0 : index
    %c0_5 = arith.constant 0 : index
    %9 = vector.load %arg2[%c0_4, %c0_5] : memref<16x128xf32, #tpu.memory_space<vmem>>, vector<16x128xf32>
    tpu.vector_store %arg2[%c0_4, %c0_5], %8 {strides = array<i32>} : memref<16x128xf32, #tpu.memory_space<vmem>>, vector<16x128xf32>,
    return
  }
  func.func @transform_0(%arg0: i32) -> (i32, i32) {
    %c0_i32 = arith.constant 0 : i32
    %c0_i32_0 = arith.constant 0 : i32
    return %arg0, %c0_i32 : i32, i32
  }
  func.func @transform_1(%arg0: i32) -> (i32, i32) {
    %c0_i32 = arith.constant 0 : i32
    %c0_i32_0 = arith.constant 0 : i32
    return %arg0, %c0_i32 : i32, i32
  }
}

</mosaic_0001>

<bundles_post_ra>
// kernel: tpu_custom_call.1
= control target key start
LH: loop header
LB: loop body
LE: loop exit
PB: predicated region body
PF: predicated region fallthrough
CT: control target
= control target key end

     0   :  { %6 = vsyncpa [#allocation3], 0  ;;  %s132_s0 = inlined_call_operand.hbm [shape: f32[16,128], index: 0, kind: input, shape index: {}]   ;;  %s133_s1 = inlined_call_operand.hbm [shape: f32[16,128], index: 1, kind: output, shape index: {}]  }
   0x1   :  { %7 = vsyncpa [#allocation4], 0  ;;  %s12_s8 = sshll.u32 %s132_s0, 4  ;;  %s112_s9 = smov [#allocation2]   ;;  %s13_s8 = int_to_ptr.hbm [resolvable:$true] %s12_s8 }
   0x2   :  { %s14_s10 = sshll.u32 %s112_s9, 4  ;;  %s113_s11 = smov 128   ;;  %s15_s10 = int_to_ptr.vmem [resolvable:$true] %s14_s10 }
   0x3   :  { %s114_s12 = smov 8  }
   0x4   :  { %20 = dma.hbm_to_vmem [thread:$0]  %s13_s8, 256, %s15_s10, [#allocation3], %s113_s11, %s113_s11, %s114_s12  }
   0x5   :  { %108 = dma.done.wait [#allocation3], 256  }
   0x6   :  { %109 = vsyncadd [#allocation3], 4294967040  ;;  %v25_v0 = vld [vmem:[#allocation2] sm:$0xff]  ;;  %v26_v1 = vld [vmem:[#allocation2 + $0x8] sm:$0xff]  ;;  %s115_s13 = smov [#allocation5]   ;;  %s43_s16 = sshll.u32 %s133_s1, 4  ;;  %s44_s16 = int_to_ptr.hbm [resolvable:$true] %s43_s16 }
   0x7   :  { %v27_v2 = vadd.f32 3.0, %v25_v0  ;;  %v28_v3 = vadd.f32 3.0, %v26_v1  ;;  %s41_s14 = sshll.u32 %s115_s13, 4  ;;  %s42_s14 = int_to_ptr.vmem [resolvable:$true] %s41_s14 }
   0x9   :  { %v29_v4 = vmax.f32 %v27_v2, 0.0  ;;  %v30_v5 = vmax.f32 %v28_v3, 0.0 }
   0xb   :  { %v31_v6 = vmin.f32 %v29_v4, 6.0  ;;  %v32_v7 = vmin.f32 %v30_v5, 6.0 }
   0xd   :  { %v33_v8 = vmul.f32 0.16666667, %v31_v6  ;;  %v34_v9 = vmul.f32 0.16666667, %v32_v7 }
   0xf   :  { %35 = vst [vmem:[#allocation5] sm:$0xff] %v33_v8 }
  0x10   :  { %36 = vst [vmem:[#allocation5 + $0x8] sm:$0xff] %v34_v9 }
  0x11   :  { %49 = dma.vmem_to_hbm [thread:$0]  %s42_s14, 256, %s44_s16, [#allocation4], %s113_s11, %s113_s11, %s114_s12  }
  0x12   :  { %110 = dma.done.wait [#allocation4], 256  }
  0x13   :  { %111 = vsyncadd [#allocation4], 4294967040 }
  0x14   :  { %54 = vsyncpa [#allocation3], 1 }
  0x15   :  { %55 = vsyncpa [#allocation4], 1 }

</bundles_post_ra>
